<compile_context>
chip_gen: v7x
topology: tpu7x:2x2x1
jax: 0.10.0
libtpu: 0.0.40
codegen_flags: <defaults>
</compile_context>

<pallas_src>
from functools import partial

import numpy as np
import jax
import jax.numpy as jnp
from jax.experimental import pallas as pl
from jax.experimental.pallas import tpu as pltpu

EPS = 1e-5


def _im2col_taps(load_tap, C, HW, W, out_dtype):
    """Build the (9*C, H*W) im2col slab from 9 lane-shifted windows.

    `load_tap(off)` must return the (C, HW) window of the flat-padded buffer
    starting at lane offset `off` (off = dy*W + dx, dy/dx in 0..2).  Row
    out-of-range is already handled by the W+1 zero padding on each side of
    the flat axis; only the column wrap (dx = 0 or 2) needs a mask.
    Pieces are f32 (8-sublane aligned) so the concat is a free vreg stack;
    the single cast to the matmul dtype happens afterwards.
    """
    col = jax.lax.broadcasted_iota(jnp.int32, (C, HW), 1) % W
    taps = []
    for dy in range(3):
        for dx in range(3):
            p = load_tap(dy * W + dx)
            if dx == 0:          # left neighbour invalid at w == 0
                p = jnp.where(col >= 1, p, jnp.zeros_like(p))
            elif dx == 2:        # right neighbour invalid at w == W-1
                p = jnp.where(col <= W - 2, p, jnp.zeros_like(p))
            taps.append(p)
    return jnp.concatenate(taps, axis=0).astype(out_dtype)   # (9*C, HW)


def _conv1_kernel(xpf_ref, w_ref, a1_ref, s_ref, ss_ref, *, width):
    """conv1 (3x3, pad 1) + per-image partial BN1 stats (sum, sum of squares)."""
    C = xpf_ref.shape[1]
    Cout, HW = a1_ref.shape[1], a1_ref.shape[2]
    W = width

    wv = w_ref[...]                                           # (Cout, 9*Cin)
    slab = _im2col_taps(
        lambda off: xpf_ref[:, :, off:off + HW].reshape(C, HW),
        C, HW, W, wv.dtype)

    acc = jnp.dot(wv, slab, preferred_element_type=jnp.float32)   # (Cout, HW) f32

    a1_ref[...] = acc.reshape(1, Cout, HW)
    s_ref[...] = jnp.sum(acc, axis=1, keepdims=True).reshape(1, Cout, 1)
    ss_ref[...] = jnp.sum(acc * acc, axis=1, keepdims=True).reshape(1, Cout, 1)


def _bn_relu_conv2_kernel(a1_ref, w_ref, sc_ref, sh_ref,
                          a2_ref, s_ref, ss_ref, y1p_ref, *, width):
    """bn1 (folded scale/shift) + relu + conv2 + per-image partial BN2 stats."""
    _, C, HW = a1_ref.shape
    Cout = a2_ref.shape[1]
    W = width
    HWP = HW + 2 * W + 2

    # bn1 + relu (per-channel scale/shift precomputed in the wrapper)
    a1 = a1_ref[...].reshape(C, HW)
    y1 = jnp.maximum(a1 * sc_ref[...] + sh_ref[...], 0.0)    # (C, HW) f32

    # Flat-padded buffer for the row shifts: zero only the two W+1 wide side
    # strips (no full-buffer zero fill), then store the interior once.
    zpad = jnp.zeros((C, W + 1), jnp.float32)
    y1p_ref[:, 0:W + 1] = zpad
    y1p_ref[:, W + 1 + HW:HWP] = zpad
    y1p_ref[:, W + 1:W + 1 + HW] = y1

    wv = w_ref[...]                                           # (Cout, 9*Cout)
    slab = _im2col_taps(
        lambda off: y1p_ref[:, off:off + HW],
        C, HW, W, wv.dtype)

    acc = jnp.dot(wv, slab, preferred_element_type=jnp.float32)   # (Cout, HW) f32

    a2_ref[...] = acc.reshape(1, Cout, HW)
    s_ref[...] = jnp.sum(acc, axis=1, keepdims=True).reshape(1, Cout, 1)
    ss_ref[...] = jnp.sum(acc * acc, axis=1, keepdims=True).reshape(1, Cout, 1)


def _bn_add_relu_kernel(a2_ref, x_ref, sc_ref, sh_ref, o_ref):
    """bn2 (folded) + residual add (straight lane-dense identity read) + relu."""
    y = a2_ref[...] * sc_ref[...] + sh_ref[...] + x_ref[...]
    o_ref[...] = jnp.maximum(y, 0.0)


def _fold_bn(s, ss, gamma, beta, m):
    """Fold batch-stat partial sums + affine into per-channel scale/shift."""
    tot = jnp.sum(s, axis=0)            # (C, 1)
    tot2 = jnp.sum(ss, axis=0)          # (C, 1)
    mean = tot / m
    var = tot2 / m - mean * mean        # biased variance (PyTorch train-mode BN)
    scale = gamma.reshape(-1, 1) * jax.lax.rsqrt(var + EPS)
    shift = beta.reshape(-1, 1) - mean * scale
    return scale, shift                 # (C, 1), (C, 1)


def basic_block_pallas(x_nchw, params, *, compute_dtype=jnp.float32):
    """x_nchw: (N, C, H, W) float32 (PyTorch layout).  Returns NCHW output."""
    w1_oihw, g1, b1 = params["w1"], params["g1"], params["b1"]
    w2_oihw, g2, b2 = params["w2"], params["g2"], params["b2"]
    Cout, Cin = w1_oihw.shape[0], w1_oihw.shape[1]
    assert Cin == Cout, "stride=1 / downsample=False path requires Cin == Cout"

    N, _, H, W = x_nchw.shape
    HW = H * W
    HWP = HW + 2 * W + 2
    M = N * H * W

    # NCHW flattens directly to the lane-dense (N, C, H*W) layout.
    xflat = x_nchw.reshape(N, Cin, HW).astype(jnp.float32)
    # Flat-padded input: W+1 zero lanes on each side handle the dy=+/-1 rows.
    xpf = jnp.pad(xflat, ((0, 0), (0, 0), (W + 1, W + 1)))

    # OIHW -> (Cout, 9*Cin), K index = (ky*3 + kx)*Cin + ci; cast once here.
    w1 = jnp.transpose(w1_oihw, (0, 2, 3, 1)).reshape(Cout, 9 * Cin).astype(compute_dtype)
    w2 = jnp.transpose(w2_oihw, (0, 2, 3, 1)).reshape(Cout, 9 * Cout).astype(compute_dtype)

    par = pltpu.CompilerParams(dimension_semantics=("parallel",))
    itemsize = jnp.dtype(compute_dtype).itemsize
    conv_cost = pl.CostEstimate(
        flops=2 * M * 9 * Cin * Cout,
        transcendentals=0,
        bytes_accessed=int(4 * N * Cin * HWP + itemsize * 9 * Cin * Cout
                           + 4 * M * Cout))

    def img_spec(c, l):
        return pl.BlockSpec((1, c, l), lambda i: (i, 0, 0))

    def wt_spec(k):
        return pl.BlockSpec((Cout, k), lambda i: (0, 0))

    ch_spec = pl.BlockSpec((Cout, 1), lambda i: (0, 0))
    stat_spec = pl.BlockSpec((1, Cout, 1), lambda i: (i, 0, 0))
    stat_shape = jax.ShapeDtypeStruct((N, Cout, 1), jnp.float32)
    act_shape = jax.ShapeDtypeStruct((N, Cout, HW), jnp.float32)

    # ---- pass 1: conv1 + partial BN1 stats --------------------------------
    a1, s1, ss1 = pl.pallas_call(
        partial(_conv1_kernel, width=W),
        grid=(N,),
        in_specs=[img_spec(Cin, HWP), wt_spec(9 * Cin)],
        out_specs=(img_spec(Cout, HW), stat_spec, stat_spec),
        out_shape=(act_shape, stat_shape, stat_shape),
        compiler_params=par,
        cost_estimate=conv_cost,
    )(xpf, w1)

    scale1, shift1 = _fold_bn(s1, ss1, g1, b1, M)

    # ---- pass 2: bn1 + relu + conv2 + partial BN2 stats --------------------
    a2, s2, ss2 = pl.pallas_call(
        partial(_bn_relu_conv2_kernel, width=W),
        grid=(N,),
        in_specs=[img_spec(Cout, HW), wt_spec(9 * Cout), ch_spec, ch_spec],
        out_specs=(img_spec(Cout, HW), stat_spec, stat_spec),
        out_shape=(act_shape, stat_shape, stat_shape),
        scratch_shapes=[pltpu.VMEM((Cout, HWP), jnp.float32)],
        compiler_params=par,
        cost_estimate=conv_cost,
    )(a1, w2, scale1, shift1)

    scale2, shift2 = _fold_bn(s2, ss2, g2, b2, M)

    # ---- pass 3: bn2 + residual add + relu ---------------------------------
    y = pl.pallas_call(
        _bn_add_relu_kernel,
        grid=(N,),
        in_specs=[img_spec(Cout, HW), img_spec(Cin, HW), ch_spec, ch_spec],
        out_specs=img_spec(Cout, HW),
        out_shape=jax.ShapeDtypeStruct((N, Cout, HW), jnp.float32),
        compiler_params=par,
    )(a2, xflat, scale2, shift2)

    return y.reshape(N, Cout, H, W)     # already NCHW


def basic_block_ref(x_nchw, params):
    """Pure-JAX reference matching PyTorch BasicBlock (train-mode BN)."""
    def conv3x3(x, w):
        return jax.lax.conv_general_dilated(
            x, w, window_strides=(1, 1), padding=((1, 1), (1, 1)),
            dimension_numbers=("NCHW", "OIHW", "NCHW"))

    def bn(x, g, b):
        mean = x.mean(axis=(0, 2, 3), keepdims=True)
        var = ((x - mean) ** 2).mean(axis=(0, 2, 3), keepdims=True)
        xn = (x - mean) * jax.lax.rsqrt(var + EPS)
        return xn * g.reshape(1, -1, 1, 1) + b.reshape(1, -1, 1, 1)

    y = jax.nn.relu(bn(conv3x3(x_nchw, params["w1"]), params["g1"], params["b1"]))
    y = bn(conv3x3(y, params["w2"]), params["g2"], params["b2"])
    return jax.nn.relu(y + x_nchw)


if __name__ == "__main__":
    key = jax.random.PRNGKey(0)
    N, C, H, W = 2, 8, 16, 16           # in_channels == out_channels, stride=1
    ks = jax.random.split(key, 7)

    x = jax.random.normal(ks[0], (N, C, H, W), jnp.float32)
    params = {
        "w1": 0.1 * jax.random.normal(ks[1], (C, C, 3, 3), jnp.float32),
        "w2": 0.1 * jax.random.normal(ks[2], (C, C, 3, 3), jnp.float32),
        "g1": 1.0 + 0.1 * jax.random.normal(ks[3], (C,), jnp.float32),
        "b1": 0.1 * jax.random.normal(ks[4], (C,), jnp.float32),
        "g2": 1.0 + 0.1 * jax.random.normal(ks[5], (C,), jnp.float32),
        "b2": 0.1 * jax.random.normal(ks[6], (C,), jnp.float32),
    }

    fn = jax.jit(basic_block_pallas, static_argnames=("compute_dtype",))
    ref = jax.block_until_ready(basic_block_ref(x, params))

    # Strict correctness check with f32 matmul operands.
    out_f32 = jax.block_until_ready(fn(x, params, compute_dtype=jnp.float32))
    np.testing.assert_allclose(np.asarray(out_f32), np.asarray(ref),
                               rtol=1e-4, atol=1e-4)

    # bf16 MXU-operand path (f32 accumulation / BN): looser tolerance.
    out_bf16 = jax.block_until_ready(fn(x, params, compute_dtype=jnp.bfloat16))
    np.testing.assert_allclose(np.asarray(out_bf16), np.asarray(ref),
                               rtol=5e-2, atol=5e-2)

    print("KERNEL_OK")
</pallas_src>

<mosaic_0001>
module attributes {stable_mosaic.version = 11 : i64} {
  func.func @_bn_relu_conv2_kernel(%arg0: i32, %arg1: memref<1x8x256xf32, #tpu.memory_space<vmem>>, %arg2: memref<8x72xf32, #tpu.memory_space<vmem>>, %arg3: memref<8x1xf32, #tpu.memory_space<vmem>>, %arg4: memref<8x1xf32, #tpu.memory_space<vmem>>, %arg5: memref<1x8x256xf32, #tpu.memory_space<vmem>>, %arg6: memref<1x8x1xf32, #tpu.memory_space<vmem>>, %arg7: memref<1x8x1xf32, #tpu.memory_space<vmem>>, %arg8: memref<8x290xf32, #tpu.memory_space<vmem>>) attributes {dimension_semantics = [#tpu.dimension_semantics<parallel>], iteration_bounds = array<i64: 2>, scalar_prefetch = 0 : i64, scratch_operands = 1 : i64, tpu.core_type = #tpu.core_type<tc>, window_params = [{transform_indices = @transform_0, window_bounds = array<i64: 1, 8, 256>}, {pipeline_mode = #tpu.pipeline_mode<synchronous>, transform_indices = @transform_1, window_bounds = array<i64: 8, 72>}, {pipeline_mode = #tpu.pipeline_mode<synchronous>, transform_indices = @transform_2, window_bounds = array<i64: 8, 1>}, {pipeline_mode = #tpu.pipeline_mode<synchronous>, transform_indices = @transform_3, window_bounds = array<i64: 8, 1>}, {transform_indices = @transform_4, window_bounds = array<i64: 1, 8, 256>}, {transform_indices = @transform_5, window_bounds = array<i64: 1, 8, 1>}, {transform_indices = @transform_6, window_bounds = array<i64: 1, 8, 1>}]} {
    %c0 = arith.constant 0 : index
    %c0_0 = arith.constant 0 : index
    %c0_1 = arith.constant 0 : index
    %0 = vector.load %arg1[%c0, %c0_0, %c0_1] : memref<1x8x256xf32, #tpu.memory_space<vmem>>, vector<1x8x256xf32>
    %1 = vector.shape_cast %0 : vector<1x8x256xf32> to vector<8x256xf32>
    %c0_2 = arith.constant 0 : index
    %c0_3 = arith.constant 0 : index
    %2 = vector.load %arg3[%c0_2, %c0_3] : memref<8x1xf32, #tpu.memory_space<vmem>>, vector<8x1xf32>
    %3 = vector.broadcast %2 : vector<8x1xf32> to vector<8x256xf32>
    %4 = arith.mulf %1, %3 : vector<8x256xf32>
    %c0_4 = arith.constant 0 : index
    %c0_5 = arith.constant 0 : index
    %5 = vector.load %arg4[%c0_4, %c0_5] : memref<8x1xf32, #tpu.memory_space<vmem>>, vector<8x1xf32>
    %6 = vector.broadcast %5 : vector<8x1xf32> to vector<8x256xf32>
    %7 = arith.addf %4, %6 : vector<8x256xf32>
    %cst = arith.constant 0.000000e+00 : f32
    %8 = vector.broadcast %cst : f32 to vector<8x256xf32>
    %9 = arith.maximumf %7, %8 : vector<8x256xf32>
    %cst_6 = arith.constant 0.000000e+00 : f32
    %10 = vector.broadcast %cst_6 : f32 to vector<8x17xf32>
    %c0_7 = arith.constant 0 : index
    %c0_8 = arith.constant 0 : index
    %11 = vector.load %arg8[%c0_7, %c0_8] : memref<8x290xf32, #tpu.memory_space<vmem>>, vector<8x17xf32>
    tpu.vector_store %arg8[%c0_7, %c0_8], %10 {strides = array<i32>} : memref<8x290xf32, #tpu.memory_space<vmem>>, vector<8x17xf32>,
    %c0_9 = arith.constant 0 : index
    %c273 = arith.constant 273 : index
    %12 = vector.load %arg8[%c0_9, %c273] : memref<8x290xf32, #tpu.memory_space<vmem>>, vector<8x17xf32>
    tpu.vector_store %arg8[%c0_9, %c273], %10 {strides = array<i32>} : memref<8x290xf32, #tpu.memory_space<vmem>>, vector<8x17xf32>,
    %c0_10 = arith.constant 0 : index
    %c17 = arith.constant 17 : index
    %13 = vector.load %arg8[%c0_10, %c17] : memref<8x290xf32, #tpu.memory_space<vmem>>, vector<8x256xf32>
    tpu.vector_store %arg8[%c0_10, %c17], %9 {strides = array<i32>} : memref<8x290xf32, #tpu.memory_space<vmem>>, vector<8x256xf32>,
    %c0_11 = arith.constant 0 : index
    %c0_12 = arith.constant 0 : index
    %14 = vector.load %arg2[%c0_11, %c0_12] : memref<8x72xf32, #tpu.memory_space<vmem>>, vector<8x72xf32>
    %15 = tpu.iota {dimensions = array<i32: 1>} : vector<8x256xi32>
    %c16_i32 = arith.constant 16 : i32
    %c0_i32 = arith.constant 0 : i32
    %16 = arith.cmpi eq, %c16_i32, %c0_i32 : i32
    %c1_i32 = arith.constant 1 : i32
    %17 = arith.select %16, %c1_i32, %c16_i32 : i32
    %18 = vector.broadcast %17 : i32 to vector<8x256xi32>
    %19 = arith.remsi %15, %18 : vector<8x256xi32>
    %c0_i32_13 = arith.constant 0 : i32
    %20 = vector.broadcast %c0_i32_13 : i32 to vector<8x256xi32>
    %21 = arith.cmpi ne, %19, %20 : vector<8x256xi32>
    %c0_i32_14 = arith.constant 0 : i32
    %22 = vector.broadcast %c0_i32_14 : i32 to vector<8x256xi32>
    %23 = arith.cmpi slt, %19, %22 : vector<8x256xi32>
    %c0_i32_15 = arith.constant 0 : i32
    %24 = arith.cmpi slt, %17, %c0_i32_15 : i32
    %25 = vector.broadcast %24 : i1 to vector<8x256xi1>
    %26 = vector.broadcast %25 : vector<8x256xi1> to vector<8x256xi1>
    %27 = arith.xori %23, %26 : vector<8x256xi1>
    %28 = arith.andi %27, %21 : vector<8x256xi1>
    %29 = vector.broadcast %17 : i32 to vector<8x256xi32>
    %30 = arith.addi %19, %29 : vector<8x256xi32>
    %31 = arith.select %28, %30, %19 : vector<8x256xi1>, vector<8x256xi32>
    %c0_16 = arith.constant 0 : index
    %c0_17 = arith.constant 0 : index
    %32 = vector.load %arg8[%c0_16, %c0_17] : memref<8x290xf32, #tpu.memory_space<vmem>>, vector<8x256xf32>
    %c1_i32_18 = arith.constant 1 : i32
    %33 = vector.broadcast %c1_i32_18 : i32 to vector<8x256xi32>
    %34 = arith.cmpi sge, %31, %33 : vector<8x256xi32>
    %cst_19 = arith.constant 0.000000e+00 : f32
    %35 = vector.broadcast %cst_19 : f32 to vector<8x256xf32>
    %36 = arith.select %34, %32, %35 : vector<8x256xi1>, vector<8x256xf32>
    %c0_20 = arith.constant 0 : index
    %c1 = arith.constant 1 : index
    %37 = vector.load %arg8[%c0_20, %c1] : memref<8x290xf32, #tpu.memory_space<vmem>>, vector<8x256xf32>
    %c0_21 = arith.constant 0 : index
    %c2 = arith.constant 2 : index
    %38 = vector.load %arg8[%c0_21, %c2] : memref<8x290xf32, #tpu.memory_space<vmem>>, vector<8x256xf32>
    %c14_i32 = arith.constant 14 : i32
    %39 = vector.broadcast %c14_i32 : i32 to vector<8x256xi32>
    %40 = arith.cmpi sle, %31, %39 : vector<8x256xi32>
    %cst_22 = arith.constant 0.000000e+00 : f32
    %41 = vector.broadcast %cst_22 : f32 to vector<8x256xf32>
    %42 = arith.select %40, %38, %41 : vector<8x256xi1>, vector<8x256xf32>
    %c0_23 = arith.constant 0 : index
    %c16 = arith.constant 16 : index
    %43 = vector.load %arg8[%c0_23, %c16] : memref<8x290xf32, #tpu.memory_space<vmem>>, vector<8x256xf32>
    %c1_i32_24 = arith.constant 1 : i32
    %44 = vector.broadcast %c1_i32_24 : i32 to vector<8x256xi32>
    %45 = arith.cmpi sge, %31, %44 : vector<8x256xi32>
    %cst_25 = arith.constant 0.000000e+00 : f32
    %46 = vector.broadcast %cst_25 : f32 to vector<8x256xf32>
    %47 = arith.select %45, %43, %46 : vector<8x256xi1>, vector<8x256xf32>
    %c0_26 = arith.constant 0 : index
    %c17_27 = arith.constant 17 : index
    %48 = vector.load %arg8[%c0_26, %c17_27] : memref<8x290xf32, #tpu.memory_space<vmem>>, vector<8x256xf32>
    %c0_28 = arith.constant 0 : index
    %c18 = arith.constant 18 : index
    %49 = vector.load %arg8[%c0_28, %c18] : memref<8x290xf32, #tpu.memory_space<vmem>>, vector<8x256xf32>
    %c14_i32_29 = arith.constant 14 : i32
    %50 = vector.broadcast %c14_i32_29 : i32 to vector<8x256xi32>
    %51 = arith.cmpi sle, %31, %50 : vector<8x256xi32>
    %cst_30 = arith.constant 0.000000e+00 : f32
    %52 = vector.broadcast %cst_30 : f32 to vector<8x256xf32>
    %53 = arith.select %51, %49, %52 : vector<8x256xi1>, vector<8x256xf32>
    %c0_31 = arith.constant 0 : index
    %c32 = arith.constant 32 : index
    %54 = vector.load %arg8[%c0_31, %c32] : memref<8x290xf32, #tpu.memory_space<vmem>>, vector<8x256xf32>
    %c1_i32_32 = arith.constant 1 : i32
    %55 = vector.broadcast %c1_i32_32 : i32 to vector<8x256xi32>
    %56 = arith.cmpi sge, %31, %55 : vector<8x256xi32>
    %cst_33 = arith.constant 0.000000e+00 : f32
    %57 = vector.broadcast %cst_33 : f32 to vector<8x256xf32>
    %58 = arith.select %56, %54, %57 : vector<8x256xi1>, vector<8x256xf32>
    %c0_34 = arith.constant 0 : index
    %c33 = arith.constant 33 : index
    %59 = vector.load %arg8[%c0_34, %c33] : memref<8x290xf32, #tpu.memory_space<vmem>>, vector<8x256xf32>
    %c0_35 = arith.constant 0 : index
    %c34 = arith.constant 34 : index
    %60 = vector.load %arg8[%c0_35, %c34] : memref<8x290xf32, #tpu.memory_space<vmem>>, vector<8x256xf32>
    %c14_i32_36 = arith.constant 14 : i32
    %61 = vector.broadcast %c14_i32_36 : i32 to vector<8x256xi32>
    %62 = arith.cmpi sle, %31, %61 : vector<8x256xi32>
    %cst_37 = arith.constant 0.000000e+00 : f32
    %63 = vector.broadcast %cst_37 : f32 to vector<8x256xf32>
    %64 = arith.select %62, %60, %63 : vector<8x256xi1>, vector<8x256xf32>
    %65 = tpu.concatenate %36, %37, %42, %47, %48, %53, %58, %59, %64 in 0 : vector<8x256xf32>, vector<8x256xf32>, vector<8x256xf32>, vector<8x256xf32>, vector<8x256xf32>, vector<8x256xf32>, vector<8x256xf32>, vector<8x256xf32>, vector<8x256xf32> -> vector<72x256xf32>
    %cst_38 = arith.constant dense<0.000000e+00> : vector<8x256xf32>
    %66 = tpu.matmul %14, %65, %cst_38 {dimension_numbers = #tpu.dot_dimension_numbers<[1], [0], [0], [1], [0, 0, 1, 1], [], []>} : vector<8x72xf32>, vector<72x256xf32>, vector<8x256xf32> -> vector<8x256xf32>
    %67 = vector.shape_cast %66 : vector<8x256xf32> to vector<1x8x256xf32>
    %c0_39 = arith.constant 0 : index
    %c0_40 = arith.constant 0 : index
    %c0_41 = arith.constant 0 : index
    %68 = vector.load %arg5[%c0_39, %c0_40, %c0_41] : memref<1x8x256xf32, #tpu.memory_space<vmem>>, vector<1x8x256xf32>
    tpu.vector_store %arg5[%c0_39, %c0_40, %c0_41], %67 {strides = array<i32>} : memref<1x8x256xf32, #tpu.memory_space<vmem>>, vector<1x8x256xf32>,
    %cst_42 = arith.constant dense<0.000000e+00> : vector<8xf32>
    %69 = vector.multi_reduction <add>, %66, %cst_42 [1] : vector<8x256xf32> to vector<8xf32>
    %70 = vector.shape_cast %69 : vector<8xf32> to vector<8x1xf32>
    %71 = vector.shape_cast %70 : vector<8x1xf32> to vector<1x8x1xf32>
    %c0_43 = arith.constant 0 : index
    %c0_44 = arith.constant 0 : index
    %c0_45 = arith.constant 0 : index
    %72 = vector.load %arg6[%c0_43, %c0_44, %c0_45] : memref<1x8x1xf32, #tpu.memory_space<vmem>>, vector<1x8x1xf32>
    tpu.vector_store %arg6[%c0_43, %c0_44, %c0_45], %71 {strides = array<i32>} : memref<1x8x1xf32, #tpu.memory_space<vmem>>, vector<1x8x1xf32>,
    %73 = arith.mulf %66, %66 : vector<8x256xf32>
    %cst_46 = arith.constant dense<0.000000e+00> : vector<8xf32>
    %74 = vector.multi_reduction <add>, %73, %cst_46 [1] : vector<8x256xf32> to vector<8xf32>
    %75 = vector.shape_cast %74 : vector<8xf32> to vector<8x1xf32>
    %76 = vector.shape_cast %75 : vector<8x1xf32> to vector<1x8x1xf32>
    %c0_47 = arith.constant 0 : index
    %c0_48 = arith.constant 0 : index
    %c0_49 = arith.constant 0 : index
    %77 = vector.load %arg7[%c0_47, %c0_48, %c0_49] : memref<1x8x1xf32, #tpu.memory_space<vmem>>, vector<1x8x1xf32>
    tpu.vector_store %arg7[%c0_47, %c0_48, %c0_49], %76 {strides = array<i32>} : memref<1x8x1xf32, #tpu.memory_space<vmem>>, vector<1x8x1xf32>,
    return
  }
  func.func @transform_0(%arg0: i32) -> (i32, i32, i32) {
    %c0_i32 = arith.constant 0 : i32
    %c0_i32_0 = arith.constant 0 : i32
    %c0_i32_1 = arith.constant 0 : i32
    return %arg0, %c0_i32, %c0_i32_0 : i32, i32, i32
  }
  func.func @transform_1(%arg0: i32) -> (i32, i32) {
    %c0_i32 = arith.constant 0 : i32
    %c0_i32_0 = arith.constant 0 : i32
    %c0_i32_1 = arith.constant 0 : i32
    return %c0_i32, %c0_i32_0 : i32, i32
  }
  func.func @transform_2(%arg0: i32) -> (i32, i32) {
    %c0_i32 = arith.constant 0 : i32
    %c0_i32_0 = arith.constant 0 : i32
    %c0_i32_1 = arith.constant 0 : i32
    return %c0_i32, %c0_i32_0 : i32, i32
  }
  func.func @transform_3(%arg0: i32) -> (i32, i32) {
    %c0_i32 = arith.constant 0 : i32
    %c0_i32_0 = arith.constant 0 : i32
    %c0_i32_1 = arith.constant 0 : i32
    return %c0_i32, %c0_i32_0 : i32, i32
  }
  func.func @transform_4(%arg0: i32) -> (i32, i32, i32) {
    %c0_i32 = arith.constant 0 : i32
    %c0_i32_0 = arith.constant 0 : i32
    %c0_i32_1 = arith.constant 0 : i32
    return %arg0, %c0_i32, %c0_i32_0 : i32, i32, i32
  }
  func.func @transform_5(%arg0: i32) -> (i32, i32, i32) {
    %c0_i32 = arith.constant 0 : i32
    %c0_i32_0 = arith.constant 0 : i32
    %c0_i32_1 = arith.constant 0 : i32
    return %arg0, %c0_i32, %c0_i32_0 : i32, i32, i32
  }
  func.func @transform_6(%arg0: i32) -> (i32, i32, i32) {
    %c0_i32 = arith.constant 0 : i32
    %c0_i32_0 = arith.constant 0 : i32
    %c0_i32_1 = arith.constant 0 : i32
    return %arg0, %c0_i32, %c0_i32_0 : i32, i32, i32
  }
}

module attributes {stable_mosaic.version = 11 : i64} {
  func.func @_conv1_kernel(%arg0: i32, %arg1: memref<1x8x290xf32, #tpu.memory_space<vmem>>, %arg2: memref<8x72xf32, #tpu.memory_space<vmem>>, %arg3: memref<1x8x256xf32, #tpu.memory_space<vmem>>, %arg4: memref<1x8x1xf32, #tpu.memory_space<vmem>>, %arg5: memref<1x8x1xf32, #tpu.memory_space<vmem>>) attributes {dimension_semantics = [#tpu.dimension_semantics<parallel>], iteration_bounds = array<i64: 2>, scalar_prefetch = 0 : i64, scratch_operands = 0 : i64, tpu.core_type = #tpu.core_type<tc>, window_params = [{transform_indices = @transform_0, window_bounds = array<i64: 1, 8, 290>}, {pipeline_mode = #tpu.pipeline_mode<synchronous>, transform_indices = @transform_1, window_bounds = array<i64: 8, 72>}, {transform_indices = @transform_2, window_bounds = array<i64: 1, 8, 256>}, {transform_indices = @transform_3, window_bounds = array<i64: 1, 8, 1>}, {transform_indices = @transform_4, window_bounds = array<i64: 1, 8, 1>}]} {
    %c0 = arith.constant 0 : index
    %c0_0 = arith.constant 0 : index
    %0 = vector.load %arg2[%c0, %c0_0] : memref<8x72xf32, #tpu.memory_space<vmem>>, vector<8x72xf32>
    %1 = tpu.iota {dimensions = array<i32: 1>} : vector<8x256xi32>
    %c16_i32 = arith.constant 16 : i32
    %c0_i32 = arith.constant 0 : i32
    %2 = arith.cmpi eq, %c16_i32, %c0_i32 : i32
    %c1_i32 = arith.constant 1 : i32
    %3 = arith.select %2, %c1_i32, %c16_i32 : i32
    %4 = vector.broadcast %3 : i32 to vector<8x256xi32>
    %5 = arith.remsi %1, %4 : vector<8x256xi32>
    %c0_i32_1 = arith.constant 0 : i32
    %6 = vector.broadcast %c0_i32_1 : i32 to vector<8x256xi32>
    %7 = arith.cmpi ne, %5, %6 : vector<8x256xi32>
    %c0_i32_2 = arith.constant 0 : i32
    %8 = vector.broadcast %c0_i32_2 : i32 to vector<8x256xi32>
    %9 = arith.cmpi slt, %5, %8 : vector<8x256xi32>
    %c0_i32_3 = arith.constant 0 : i32
    %10 = arith.cmpi slt, %3, %c0_i32_3 : i32
    %11 = vector.broadcast %10 : i1 to vector<8x256xi1>
    %12 = vector.broadcast %11 : vector<8x256xi1> to vector<8x256xi1>
    %13 = arith.xori %9, %12 : vector<8x256xi1>
    %14 = arith.andi %13, %7 : vector<8x256xi1>
    %15 = vector.broadcast %3 : i32 to vector<8x256xi32>
    %16 = arith.addi %5, %15 : vector<8x256xi32>
    %17 = arith.select %14, %16, %5 : vector<8x256xi1>, vector<8x256xi32>
    %c0_4 = arith.constant 0 : index
    %c0_5 = arith.constant 0 : index
    %c0_6 = arith.constant 0 : index
    %18 = vector.load %arg1[%c0_4, %c0_5, %c0_6] : memref<1x8x290xf32, #tpu.memory_space<vmem>>, vector<1x8x256xf32>
    %19 = vector.shape_cast %18 : vector<1x8x256xf32> to vector<8x256xf32>
    %c1_i32_7 = arith.constant 1 : i32
    %20 = vector.broadcast %c1_i32_7 : i32 to vector<8x256xi32>
    %21 = arith.cmpi sge, %17, %20 : vector<8x256xi32>
    %cst = arith.constant 0.000000e+00 : f32
    %22 = vector.broadcast %cst : f32 to vector<8x256xf32>
    %23 = arith.select %21, %19, %22 : vector<8x256xi1>, vector<8x256xf32>
    %c0_8 = arith.constant 0 : index
    %c0_9 = arith.constant 0 : index
    %c1 = arith.constant 1 : index
    %24 = vector.load %arg1[%c0_8, %c0_9, %c1] : memref<1x8x290xf32, #tpu.memory_space<vmem>>, vector<1x8x256xf32>
    %25 = vector.shape_cast %24 : vector<1x8x256xf32> to vector<8x256xf32>
    %c0_10 = arith.constant 0 : index
    %c0_11 = arith.constant 0 : index
    %c2 = arith.constant 2 : index
    %26 = vector.load %arg1[%c0_10, %c0_11, %c2] : memref<1x8x290xf32, #tpu.memory_space<vmem>>, vector<1x8x256xf32>
    %27 = vector.shape_cast %26 : vector<1x8x256xf32> to vector<8x256xf32>
    %c14_i32 = arith.constant 14 : i32
    %28 = vector.broadcast %c14_i32 : i32 to vector<8x256xi32>
    %29 = arith.cmpi sle, %17, %28 : vector<8x256xi32>
    %cst_12 = arith.constant 0.000000e+00 : f32
    %30 = vector.broadcast %cst_12 : f32 to vector<8x256xf32>
    %31 = arith.select %29, %27, %30 : vector<8x256xi1>, vector<8x256xf32>
    %c0_13 = arith.constant 0 : index
    %c0_14 = arith.constant 0 : index
    %c16 = arith.constant 16 : index
    %32 = vector.load %arg1[%c0_13, %c0_14, %c16] : memref<1x8x290xf32, #tpu.memory_space<vmem>>, vector<1x8x256xf32>
    %33 = vector.shape_cast %32 : vector<1x8x256xf32> to vector<8x256xf32>
    %c1_i32_15 = arith.constant 1 : i32
    %34 = vector.broadcast %c1_i32_15 : i32 to vector<8x256xi32>
    %35 = arith.cmpi sge, %17, %34 : vector<8x256xi32>
    %cst_16 = arith.constant 0.000000e+00 : f32
    %36 = vector.broadcast %cst_16 : f32 to vector<8x256xf32>
    %37 = arith.select %35, %33, %36 : vector<8x256xi1>, vector<8x256xf32>
    %c0_17 = arith.constant 0 : index
    %c0_18 = arith.constant 0 : index
    %c17 = arith.constant 17 : index
    %38 = vector.load %arg1[%c0_17, %c0_18, %c17] : memref<1x8x290xf32, #tpu.memory_space<vmem>>, vector<1x8x256xf32>
    %39 = vector.shape_cast %38 : vector<1x8x256xf32> to vector<8x256xf32>
    %c0_19 = arith.constant 0 : index
    %c0_20 = arith.constant 0 : index
    %c18 = arith.constant 18 : index
    %40 = vector.load %arg1[%c0_19, %c0_20, %c18] : memref<1x8x290xf32, #tpu.memory_space<vmem>>, vector<1x8x256xf32>
    %41 = vector.shape_cast %40 : vector<1x8x256xf32> to vector<8x256xf32>
    %c14_i32_21 = arith.constant 14 : i32
    %42 = vector.broadcast %c14_i32_21 : i32 to vector<8x256xi32>
    %43 = arith.cmpi sle, %17, %42 : vector<8x256xi32>
    %cst_22 = arith.constant 0.000000e+00 : f32
    %44 = vector.broadcast %cst_22 : f32 to vector<8x256xf32>
    %45 = arith.select %43, %41, %44 : vector<8x256xi1>, vector<8x256xf32>
    %c0_23 = arith.constant 0 : index
    %c0_24 = arith.constant 0 : index
    %c32 = arith.constant 32 : index
    %46 = vector.load %arg1[%c0_23, %c0_24, %c32] : memref<1x8x290xf32, #tpu.memory_space<vmem>>, vector<1x8x256xf32>
    %47 = vector.shape_cast %46 : vector<1x8x256xf32> to vector<8x256xf32>
    %c1_i32_25 = arith.constant 1 : i32
    %48 = vector.broadcast %c1_i32_25 : i32 to vector<8x256xi32>
    %49 = arith.cmpi sge, %17, %48 : vector<8x256xi32>
    %cst_26 = arith.constant 0.000000e+00 : f32
    %50 = vector.broadcast %cst_26 : f32 to vector<8x256xf32>
    %51 = arith.select %49, %47, %50 : vector<8x256xi1>, vector<8x256xf32>
    %c0_27 = arith.constant 0 : index
    %c0_28 = arith.constant 0 : index
    %c33 = arith.constant 33 : index
    %52 = vector.load %arg1[%c0_27, %c0_28, %c33] : memref<1x8x290xf32, #tpu.memory_space<vmem>>, vector<1x8x256xf32>
    %53 = vector.shape_cast %52 : vector<1x8x256xf32> to vector<8x256xf32>
    %c0_29 = arith.constant 0 : index
    %c0_30 = arith.constant 0 : index
    %c34 = arith.constant 34 : index
    %54 = vector.load %arg1[%c0_29, %c0_30, %c34] : memref<1x8x290xf32, #tpu.memory_space<vmem>>, vector<1x8x256xf32>
    %55 = vector.shape_cast %54 : vector<1x8x256xf32> to vector<8x256xf32>
    %c14_i32_31 = arith.constant 14 : i32
    %56 = vector.broadcast %c14_i32_31 : i32 to vector<8x256xi32>
    %57 = arith.cmpi sle, %17, %56 : vector<8x256xi32>
    %cst_32 = arith.constant 0.000000e+00 : f32
    %58 = vector.broadcast %cst_32 : f32 to vector<8x256xf32>
    %59 = arith.select %57, %55, %58 : vector<8x256xi1>, vector<8x256xf32>
    %60 = tpu.concatenate %23, %25, %31, %37, %39, %45, %51, %53, %59 in 0 : vector<8x256xf32>, vector<8x256xf32>, vector<8x256xf32>, vector<8x256xf32>, vector<8x256xf32>, vector<8x256xf32>, vector<8x256xf32>, vector<8x256xf32>, vector<8x256xf32> -> vector<72x256xf32>
    %cst_33 = arith.constant dense<0.000000e+00> : vector<8x256xf32>
    %61 = tpu.matmul %0, %60, %cst_33 {dimension_numbers = #tpu.dot_dimension_numbers<[1], [0], [0], [1], [0, 0, 1, 1], [], []>} : vector<8x72xf32>, vector<72x256xf32>, vector<8x256xf32> -> vector<8x256xf32>
    %62 = vector.shape_cast %61 : vector<8x256xf32> to vector<1x8x256xf32>
    %c0_34 = arith.constant 0 : index
    %c0_35 = arith.constant 0 : index
    %c0_36 = arith.constant 0 : index
    %63 = vector.load %arg3[%c0_34, %c0_35, %c0_36] : memref<1x8x256xf32, #tpu.memory_space<vmem>>, vector<1x8x256xf32>
    tpu.vector_store %arg3[%c0_34, %c0_35, %c0_36], %62 {strides = array<i32>} : memref<1x8x256xf32, #tpu.memory_space<vmem>>, vector<1x8x256xf32>,
    %cst_37 = arith.constant dense<0.000000e+00> : vector<8xf32>
    %64 = vector.multi_reduction <add>, %61, %cst_37 [1] : vector<8x256xf32> to vector<8xf32>
    %65 = vector.shape_cast %64 : vector<8xf32> to vector<8x1xf32>
    %66 = vector.shape_cast %65 : vector<8x1xf32> to vector<1x8x1xf32>
    %c0_38 = arith.constant 0 : index
    %c0_39 = arith.constant 0 : index
    %c0_40 = arith.constant 0 : index
    %67 = vector.load %arg4[%c0_38, %c0_39, %c0_40] : memref<1x8x1xf32, #tpu.memory_space<vmem>>, vector<1x8x1xf32>
    tpu.vector_store %arg4[%c0_38, %c0_39, %c0_40], %66 {strides = array<i32>} : memref<1x8x1xf32, #tpu.memory_space<vmem>>, vector<1x8x1xf32>,
    %68 = arith.mulf %61, %61 : vector<8x256xf32>
    %cst_41 = arith.constant dense<0.000000e+00> : vector<8xf32>
    %69 = vector.multi_reduction <add>, %68, %cst_41 [1] : vector<8x256xf32> to vector<8xf32>
    %70 = vector.shape_cast %69 : vector<8xf32> to vector<8x1xf32>
    %71 = vector.shape_cast %70 : vector<8x1xf32> to vector<1x8x1xf32>
    %c0_42 = arith.constant 0 : index
    %c0_43 = arith.constant 0 : index
    %c0_44 = arith.constant 0 : index
    %72 = vector.load %arg5[%c0_42, %c0_43, %c0_44] : memref<1x8x1xf32, #tpu.memory_space<vmem>>, vector<1x8x1xf32>
    tpu.vector_store %arg5[%c0_42, %c0_43, %c0_44], %71 {strides = array<i32>} : memref<1x8x1xf32, #tpu.memory_space<vmem>>, vector<1x8x1xf32>,
    return
  }
  func.func @transform_0(%arg0: i32) -> (i32, i32, i32) {
    %c0_i32 = arith.constant 0 : i32
    %c0_i32_0 = arith.constant 0 : i32
    %c0_i32_1 = arith.constant 0 : i32
    return %arg0, %c0_i32, %c0_i32_0 : i32, i32, i32
  }
  func.func @transform_1(%arg0: i32) -> (i32, i32) {
    %c0_i32 = arith.constant 0 : i32
    %c0_i32_0 = arith.constant 0 : i32
    %c0_i32_1 = arith.constant 0 : i32
    return %c0_i32, %c0_i32_0 : i32, i32
  }
  func.func @transform_2(%arg0: i32) -> (i32, i32, i32) {
    %c0_i32 = arith.constant 0 : i32
    %c0_i32_0 = arith.constant 0 : i32
    %c0_i32_1 = arith.constant 0 : i32
    return %arg0, %c0_i32, %c0_i32_0 : i32, i32, i32
  }
  func.func @transform_3(%arg0: i32) -> (i32, i32, i32) {
    %c0_i32 = arith.constant 0 : i32
    %c0_i32_0 = arith.constant 0 : i32
    %c0_i32_1 = arith.constant 0 : i32
    return %arg0, %c0_i32, %c0_i32_0 : i32, i32, i32
  }
  func.func @transform_4(%arg0: i32) -> (i32, i32, i32) {
    %c0_i32 = arith.constant 0 : i32
    %c0_i32_0 = arith.constant 0 : i32
    %c0_i32_1 = arith.constant 0 : i32
    return %arg0, %c0_i32, %c0_i32_0 : i32, i32, i32
  }
}

module attributes {stable_mosaic.version = 11 : i64} {
  func.func @_bn_add_relu_kernel(%arg0: i32, %arg1: memref<1x8x256xf32, #tpu.memory_space<vmem>>, %arg2: memref<1x8x256xf32, #tpu.memory_space<vmem>>, %arg3: memref<8x1xf32, #tpu.memory_space<vmem>>, %arg4: memref<8x1xf32, #tpu.memory_space<vmem>>, %arg5: memref<1x8x256xf32, #tpu.memory_space<vmem>>) attributes {dimension_semantics = [#tpu.dimension_semantics<parallel>], iteration_bounds = array<i64: 2>, scalar_prefetch = 0 : i64, scratch_operands = 0 : i64, tpu.core_type = #tpu.core_type<tc>, window_params = [{transform_indices = @transform_0, window_bounds = array<i64: 1, 8, 256>}, {transform_indices = @transform_1, window_bounds = array<i64: 1, 8, 256>}, {pipeline_mode = #tpu.pipeline_mode<synchronous>, transform_indices = @transform_2, window_bounds = array<i64: 8, 1>}, {pipeline_mode = #tpu.pipeline_mode<synchronous>, transform_indices = @transform_3, window_bounds = array<i64: 8, 1>}, {transform_indices = @transform_4, window_bounds = array<i64: 1, 8, 256>}]} {
    %c0 = arith.constant 0 : index
    %c0_0 = arith.constant 0 : index
    %c0_1 = arith.constant 0 : index
    %0 = vector.load %arg1[%c0, %c0_0, %c0_1] : memref<1x8x256xf32, #tpu.memory_space<vmem>>, vector<1x8x256xf32>
    %c0_2 = arith.constant 0 : index
    %c0_3 = arith.constant 0 : index
    %1 = vector.load %arg3[%c0_2, %c0_3] : memref<8x1xf32, #tpu.memory_space<vmem>>, vector<8x1xf32>
    %2 = vector.shape_cast %1 : vector<8x1xf32> to vector<1x8x1xf32>
    %3 = vector.broadcast %2 : vector<1x8x1xf32> to vector<1x8x256xf32>
    %4 = arith.mulf %0, %3 : vector<1x8x256xf32>
    %c0_4 = arith.constant 0 : index
    %c0_5 = arith.constant 0 : index
    %5 = vector.load %arg4[%c0_4, %c0_5] : memref<8x1xf32, #tpu.memory_space<vmem>>, vector<8x1xf32>
    %6 = vector.shape_cast %5 : vector<8x1xf32> to vector<1x8x1xf32>
    %7 = vector.broadcast %6 : vector<1x8x1xf32> to vector<1x8x256xf32>
    %8 = arith.addf %4, %7 : vector<1x8x256xf32>
    %c0_6 = arith.constant 0 : index
    %c0_7 = arith.constant 0 : index
    %c0_8 = arith.constant 0 : index
    %9 = vector.load %arg2[%c0_6, %c0_7, %c0_8] : memref<1x8x256xf32, #tpu.memory_space<vmem>>, vector<1x8x256xf32>
    %10 = arith.addf %8, %9 : vector<1x8x256xf32>
    %cst = arith.constant 0.000000e+00 : f32
    %11 = vector.broadcast %cst : f32 to vector<1x8x256xf32>
    %12 = arith.maximumf %10, %11 : vector<1x8x256xf32>
    %c0_9 = arith.constant 0 : index
    %c0_10 = arith.constant 0 : index
    %c0_11 = arith.constant 0 : index
    %13 = vector.load %arg5[%c0_9, %c0_10, %c0_11] : memref<1x8x256xf32, #tpu.memory_space<vmem>>, vector<1x8x256xf32>
    tpu.vector_store %arg5[%c0_9, %c0_10, %c0_11], %12 {strides = array<i32>} : memref<1x8x256xf32, #tpu.memory_space<vmem>>, vector<1x8x256xf32>,
    return
  }
  func.func @transform_0(%arg0: i32) -> (i32, i32, i32) {
    %c0_i32 = arith.constant 0 : i32
    %c0_i32_0 = arith.constant 0 : i32
    %c0_i32_1 = arith.constant 0 : i32
    return %arg0, %c0_i32, %c0_i32_0 : i32, i32, i32
  }
  func.func @transform_1(%arg0: i32) -> (i32, i32, i32) {
    %c0_i32 = arith.constant 0 : i32
    %c0_i32_0 = arith.constant 0 : i32
    %c0_i32_1 = arith.constant 0 : i32
    return %arg0, %c0_i32, %c0_i32_0 : i32, i32, i32
  }
  func.func @transform_2(%arg0: i32) -> (i32, i32) {
    %c0_i32 = arith.constant 0 : i32
    %c0_i32_0 = arith.constant 0 : i32
    %c0_i32_1 = arith.constant 0 : i32
    return %c0_i32, %c0_i32_0 : i32, i32
  }
  func.func @transform_3(%arg0: i32) -> (i32, i32) {
    %c0_i32 = arith.constant 0 : i32
    %c0_i32_0 = arith.constant 0 : i32
    %c0_i32_1 = arith.constant 0 : i32
    return %c0_i32, %c0_i32_0 : i32, i32
  }
  func.func @transform_4(%arg0: i32) -> (i32, i32, i32) {
    %c0_i32 = arith.constant 0 : i32
    %c0_i32_0 = arith.constant 0 : i32
    %c0_i32_1 = arith.constant 0 : i32
    return %arg0, %c0_i32, %c0_i32_0 : i32, i32, i32
  }
}

</mosaic_0001>

<bundles_post_ra>
// kernel: basic_block_pallas.3
= control target key start
LH: loop header
LB: loop body
LE: loop exit
PB: predicated region body
PF: predicated region fallthrough
CT: control target
= control target key end

     0   :  { %s709_s15 = smov 0   ;;  %s802_s0 = inlined_call_operand.vmem [shape: f32[2,8,290], index: 0, kind: input, shape index: {}]   ;;  %s803_s1 = inlined_call_operand.vmem [shape: f32[8,72], index: 1, kind: input, shape index: {}]   ;;  %s804_s2 = inlined_call_operand.vmem [shape: f32[2,8,256], index: 2, kind: output, shape index: {0}]   ;;  %s805_s3 = inlined_call_operand.vmem [shape: f32[2,8,1], index: 3, kind: output, shape index: {1}]   ;;  %s806_s4 = inlined_call_operand.vmem [shape: f32[2,8,1], index: 4, kind: output, shape index: {2}]  }
   0x1 LB: > { %s562_s16 = sadd.s32 4294967295, %s672_s15   ;;  %p566_p0 = scmp.ge.s32.totalorder %s672_s15, 1  ;;  %s672_s15 = sphi %s709_s15, %s15_s15  }
   0x2   : > { %p167_p1 = scmp.lt.s32.totalorder %s672_s15, 3 }
   0x4   : > { %p168_p2 = pnand %p566_p0, %p167_p1 }
   0x5   : > { %p201_p3 = scmp.lt.s32.totalorder (!%p168_p2), %s562_s16, 1  ;;  %s674_s21 = smov (!%p168_p2), 126   ;;  %v681_v4 = vmov (!%p168_p2), 0.0   ;;  %v220_v5 = vlaneseq (!%p168_p2)  ;;  %vm330_vm0 = vcmask (!%p168_p2), 1039360   ;;  %vm683_vm3 = vmmov (!%p168_p2), 1  }
   0x6   : > { %171 = sbr.rel (%p168_p2) target bundleno = 529 (0x211), region = 28  ;;  %s675_s22 = smov (!%p168_p2), 127   ;;  %425 = vmatprep.mubr.f32.mxu0 (!%p168_p2), %v681_v4  ;;  %vm278_vm6 = vcmask (!%p168_p2), 916480   ;;  %vm265_vm7 = vcmask (!%p168_p2), 1031168   ;;  %vm341_vm12 = vcmask (!%p168_p2), 908288   ;;  %vm291_vm13 = vcmask (!%p168_p2), 900096  }
   0x7   : > { %s676_s23 = smov (!%p168_p2), 112   ;;  %s677_s24 = smov (!%p168_p2), 111   ;;  %v221_v6 = vand.u32 (!%p168_p2), 127, %v220_v5 }
   0x8   : > { %s678_s25 = smov (!%p168_p2), 110   ;;  %s679_s26 = smov (!%p168_p2), 95  }
   0x9   : > { %s680_s27 = smov (!%p168_p2), 96   ;;  %s682_s28 = smov (!%p168_p2), 94   ;;  %v222_v7 = vadd.s32 (!%p168_p2), 128, %v221_v6  ;;  %v227_v9 = vand.u32 (!%p168_p2), 15, %v221_v6  ;;  %v219_v6 = vld [vmem:[%s803_s1] sm:$0xff] (!%p168_p2) }
   0xb   : > { %v234_v8 = vand.u32 (!%p168_p2), 15, %v222_v7  ;;  %vm727_vm2 = vcmp.ge.s32.totalorder (!%p168_p2), %v227_v9, 1  ;;  %vm753_vm9 = vcmp.le.s32.totalorder (!%p168_p2), %v227_v9, 14 }
   0xc   : > { %vm747_vm8 = vmpackc.low (!%p168_p2), %vm683_vm3, %vm727_vm2 }
   0xd   : > { %s820_s16 = smov (!%p201_p3, %s562_s16), 1  ;;  %vm723_vm1 = vcmp.ge.s32.totalorder %v234_v8, 1  ;;  %vm739_vm5 = vcmp.le.s32.totalorder %v234_v8, 14  ;;  %vm598_vm11 = vmpackc.low %vm727_vm2, %vm753_vm9  ;;  %vm317_vm2 = vcmask 769024  }
   0xe   : > { %s612_s17 = smul.u32 24, %s820_s16  ;;  %vm735_vm4 = vmpackc.low %vm683_vm3, %vm723_vm1  ;;  %s587_s5 = sshll.u32 %s820_s16, 4 }
   0xf   : > { %vm595_vm10 = vmpackc.low %vm723_vm1, %vm739_vm5  ;;  %vm304_vm1 = vcmask 785408   ;;  %s210_s8 = scalar_lea.vmem %s804_s2, %s587_s5  ;;  %s570_s9 = sshll.u32 %s820_s16, 3 }
  0x10   : > { %s205_s20 = scalar_lea.vmem %s802_s0, %s612_s17  ;;  %vm601_vm14 = vmpackc.low %vm739_vm5, %vm683_vm3  ;;  %s214_s12 = scalar_lea.vmem %s805_s3, %s570_s9 }
  0x11   : > { %v248_v0 = vld [vmem:[%s205_s20 + $0x8] sm:$0xff]  ;;  %v253_v1 = vld [vmem:[%s205_s20 + $0x10] sm:$0xff]  ;;  %v247_v3 = vld [vmem:[%s205_s20] sm:$0xff]  ;;  %s218_s17 = scalar_lea.vmem %s806_s4, %s570_s9 }
  0x12   : > { %v636_v2 = vpack.i.bf16 %v253_v1, %v248_v0  ;;  %vm604_vm15 = vmpackc.low %vm753_vm9, %vm683_vm3  ;;  %vm357_vm3 = vcmask 588800  }
  0x14   : > { %637 = vrot.lane.b32.xlu1 %v636_v2, %s674_s21  ;;  %632 = vrot.lane.b32.xlu0 %v636_v2, %s675_s22 }
  0x18   : > { %642 = vrot.lane.b32.xlu1 %v636_v2, %s676_s23  ;;  %324 = vrot.lane.b32.xlu0 %v247_v3, %s675_s22 }
  0x1c   : > { %272 = vrot.lane.b32.xlu1 %v247_v3, %s676_s23  ;;  %259 = vrot.lane.b32.xlu0 %v247_v3, %s674_s21 }
  0x20   : > { %652 = vrot.lane.b32.xlu1 %v636_v2, %s677_s24  ;;  %647 = vrot.lane.b32.xlu0 %v636_v2, %s678_s25 }
  0x24   : > { %335 = vrot.lane.b32.xlu1 %v247_v3, %s677_s24  ;;  %285 = vrot.lane.b32.xlu0 %v247_v3, %s678_s25 }
  0x28   : > { %662 = vrot.lane.b32.xlu1 %v636_v2, %s679_s26  ;;  %657 = vrot.lane.b32.xlu0 %v636_v2, %s680_s27 }
  0x2c   : > { %346 = vrot.lane.b32.xlu1 %v247_v3, %s679_s26  ;;  %298 = vrot.lane.b32.xlu0 %v247_v3, %s680_s27 }
  0x30   : > { %315 = vrot.lane.b32.xlu1 %v253_v1, %s682_s28  ;;  %313 = vrot.lane.b32.xlu0 %v248_v0, %s682_s28 }
  0x34   : > { %311 = vrot.lane.b32.xlu0 %v247_v3, %s682_s28 }
  0x86   : > { %v638_v10 = vpop.permute.xlu1 %637  ;;  %v633_v11 = vpop.permute.xlu0 %632 }
  0x87   : > { %v635_v13 = vunpack.i.h.bf16 %v633_v11  ;;  %v634_v14 = vunpack.i.l.bf16 %v633_v11  ;;  %v640_v16 = vunpack.i.h.bf16 %v638_v10  ;;  %v639_v17 = vunpack.i.l.bf16 %v638_v10 }
  0x89   : > { %v332_v18 = vsel %vm330_vm0, %v634_v14, %v635_v13  ;;  %v267_v31 = vsel %vm265_vm7, %v639_v17, %v640_v16 }
  0x8a   : > { %v643_v20 = vpop.permute.xlu1 %642  ;;  %v325_v21 = vpop.permute.xlu0 %324  ;;  %v588_v23 = vpack.c.bf16 %v332_v18, %v248_v0 }
  0x8b   : > { %v645_v24 = vunpack.i.h.bf16 %v643_v20  ;;  %v644_v25 = vunpack.i.l.bf16 %v643_v20  ;;  %v331_v26 = vsel %vm330_vm0, %v325_v21, %v634_v14  ;;  %vm352_vm0 = vcmask 777216  }
  0x8c   : > { %v591_v28 = vpack.c.bf16 %v331_v26, %v247_v3  ;;  %590 = vmatprep.subr.msk.bf16.mxu0 %vm735_vm4, %v588_v23 }
  0x8d   : > { %v280_v30 = vsel %vm278_vm6, %v644_v25, %v645_v24 }
  0x8e   : > { %v273_v32 = vpop.permute.xlu1 %272  ;;  %593 = vmatpush1.bf16.msk.msra.mxu0 %vm747_vm8, %v591_v28  ;;  %v594_v33 = vpack.c.bf16 %v280_v30, %v267_v31  ;;  %v260_v34 = vpop.permute.xlu0 %259 }
  0x8f   : > { %v279_v35 = vsel %vm278_vm6, %v273_v32, %v644_v25  ;;  %v266_v36 = vsel %vm265_vm7, %v260_v34, %v639_v17 }
  0x90   : > { %v597_v37 = vpack.c.bf16 %v279_v35, %v266_v36  ;;  %596 = vmatprep.subr.msk.bf16.mxu0 %vm595_vm10, %v594_v33 }
  0x92   : > { %v653_v38 = vpop.permute.xlu1 %652  ;;  %599 = vmatpush1.bf16.msk.msra.mxu0 %vm598_vm11, %v597_v37  ;;  %v648_v39 = vpop.permute.xlu0 %647 }
  0x93   : > { %v655_v40 = vunpack.i.h.bf16 %v653_v38  ;;  %v654_v41 = vunpack.i.l.bf16 %v653_v38  ;;  %v650_v42 = vunpack.i.h.bf16 %v648_v39  ;;  %v649_v43 = vunpack.i.l.bf16 %v648_v39 }
  0x95   : > { %v343_v44 = vsel %vm341_vm12, %v654_v41, %v655_v40  ;;  %v293_v45 = vsel %vm291_vm13, %v649_v43, %v650_v42 }
  0x96   : > { %v336_v46 = vpop.permute.xlu1 %335  ;;  %v286_v47 = vpop.permute.xlu0 %285  ;;  %v600_v48 = vpack.c.bf16 %v293_v45, %v343_v44 }
  0x97   : > { %v342_v49 = vsel %vm341_vm12, %v336_v46, %v654_v41  ;;  %v292_v50 = vsel %vm291_vm13, %v286_v47, %v649_v43 }
  0x98   : > { %v603_v51 = vpack.c.bf16 %v292_v50, %v342_v49  ;;  %602 = vmatprep.subr.msk.bf16.mxu0 %vm601_vm14, %v600_v48 }
  0x9a   : > { %v663_v52 = vpop.permute.xlu1 %662  ;;  %v658_v53 = vpop.permute.xlu0 %657  ;;  %605 = vmatpush1.bf16.msk.msra.mxu0 %vm604_vm15, %v603_v51 }
  0x9b   : > { %v665_v54 = vunpack.i.h.bf16 %v663_v52  ;;  %v664_v55 = vunpack.i.l.bf16 %v663_v52  ;;  %v660_v56 = vunpack.i.h.bf16 %v658_v53  ;;  %v659_v57 = vunpack.i.l.bf16 %v658_v53 }
  0x9d   : > { %v354_v58 = vsel %vm352_vm0, %v664_v55, %v665_v54  ;;  %v306_v59 = vsel %vm304_vm1, %v659_v57, %v660_v56 }
  0x9e   : > { %v347_v60 = vpop.permute.xlu1 %346  ;;  %v299_v61 = vpop.permute.xlu0 %298  ;;  %v606_v62 = vpack.c.bf16 %v354_v58, %v306_v59 }
  0x9f   : > { %v353_v63 = vsel %vm352_vm0, %v347_v60, %v664_v55  ;;  %v305_v0 = vsel %vm304_vm1, %v299_v61, %v659_v57 }
  0xa0   : > { %v609_v1 = vpack.c.bf16 %v353_v63, %v305_v0  ;;  %608 = vmatprep.subr.msk.bf16.mxu0 %vm735_vm4, %v606_v62  ;;  %vm437_vm4 = vcmask 7168  }
  0xa2   : > { %v316_v2 = vpop.permute.xlu1 %315  ;;  %v314_v3 = vpop.permute.xlu0 %313  ;;  %611 = vmatpush1.bf16.msk.msra.mxu0 %vm747_vm8, %v609_v1 }
  0xa3   : > { %v319_v4 = vsel %vm317_vm2, %v314_v3, %v316_v2 }
  0xa4   : > { %582 = vmatprep.subr.msk.mxu0 %vm739_vm5, %v319_v4 }
  0xa6   : > { %v312_v5 = vpop.permute.xlu0 %311 }
  0xa7   : > { %v318_v7 = vsel %vm317_vm2, %v312_v5, %v314_v3 }
  0xa8   : > { %583 = vmatpush1.msk.msra.mxu0 %vm753_vm9, %v318_v7 }
  0xa9   : > { %584 = vmatmul.mubr.msk.f32.vlgmr.msra.gmra.mrb[0].mxu0 %vm357_vm3, %v219_v6 }
 0x17c   : > { %v427_v8 = vpop.f32.mrb[0].mxu0 }
 0x17d   : > { %v429_v9 = vpop.f32.mrb[1].mxu0  ;;  %432 = vst [vmem:[%s210_s8] sm:$0xff] %v427_v8  ;;  %v439_v10 = vmul.f32 %v427_v8, %v427_v8 }
 0x17e   : > { %433 = vst [vmem:[%s210_s8 + $0x8] sm:$0xff] %v429_v9  ;;  %v440_v11 = vmul.f32 %v429_v9, %v429_v9  ;;  %v434_v12 = vadd.f32 %v429_v9, %v427_v8 }
 0x180   : > { %435 = vadd.xlane.f32.xlu1 %v434_v12  ;;  %v441_v13 = vadd.f32 %v440_v11, %v439_v10 }
 0x182   : > { %442 = vadd.xlane.f32.xlu0 %v441_v13 }
 0x20d   : > { %v436_v14 = vpop.xlane.xlu1 %435 }
 0x20e   : > { %438 = vst.msk [vmem:[%s214_s12] sm:$0xff] %vm437_vm4, %v436_v14 }
 0x20f   : > { %v443_v15 = vpop.xlane.xlu0 %442 }
 0x210   : > { %444 = vst.msk [vmem:[%s218_s17] sm:$0xff] %vm437_vm4, %v443_v15 }
 0x211 PF: > { %s15_s15 = sadd.s32 1, %s672_s15  }
 0x212   : > { %p12_p4 = scmp.ge.s32.totalorder %s15_s15, 4  }
 0x214   :  { %14 = sbr.rel (!%p12_p4) target bundleno = 1 (0x1), region = 82 }

// kernel: basic_block_pallas.4
= control target key start
LH: loop header
LB: loop body
LE: loop exit
PB: predicated region body
PF: predicated region fallthrough
CT: control target
= control target key end

     0   :  { %s817_s21 = smov 0   ;;  %s941_s0 = inlined_call_operand.vmem [shape: f32[2,8,256], index: 0, kind: input, shape index: {}]   ;;  %s942_s1 = inlined_call_operand.vmem [shape: f32[8,72], index: 1, kind: input, shape index: {}]   ;;  %s943_s2 = inlined_call_operand.vmem [shape: f32[8,1], index: 2, kind: input, shape index: {}]   ;;  %s944_s3 = inlined_call_operand.vmem [shape: f32[8,1], index: 3, kind: input, shape index: {}]   ;;  %s945_s4 = inlined_call_operand.vmem [shape: f32[2,8,256], index: 4, kind: output, shape index: {0}]   ;;  %s946_s5 = inlined_call_operand.vmem [shape: f32[2,8,1], index: 5, kind: output, shape index: {1}]   ;;  %s947_s6 = inlined_call_operand.vmem [shape: f32[2,8,1], index: 6, kind: output, shape index: {2}]  }
   0x1 LB: > { %s654_s22 = sadd.s32 4294967295, %s768_s21   ;;  %p658_p0 = scmp.ge.s32.totalorder %s768_s21, 1  ;;  %s768_s21 = sphi %s817_s21, %s17_s21  }
   0x2   : > { %p217_p1 = scmp.lt.s32.totalorder %s768_s21, 3 }
   0x4   : > { %p218_p2 = pnand %p658_p0, %p217_p1 }
   0x5   : > { %v275_v0 = vld [vmem:[%s943_s2] sm:$0xff] (!%p218_p2)  ;;  %v770_v1 = vmov (!%p218_p2), 0   ;;  %vm293_vm0 = vcmask (!%p218_p2), 138240   ;;  %v771_v3 = vmov (!%p218_p2), 0.0   ;;  %p255_p3 = scmp.lt.s32.totalorder (!%p218_p2), %s654_s22, 1  ;;  %vm295_vm1 = vcmask (!%p218_p2), 277640  }
   0x6   : > { %221 = sbr.rel (%p218_p2) target bundleno = 776 (0x308), region = 36  ;;  %726 = vset.pattern.permute.xlu0 (!%p218_p2), %v770_v1  ;;  %v283_v2 = vld [vmem:[%s944_s3] sm:$0xff] (!%p218_p2)  ;;  %294 = vst.msk [vmem:[#allocation2] sm:$0xff] (!%p218_p2), %vm293_vm0, %v771_v3  ;;  %517 = vmatprep.mubr.f32.mxu0 (!%p218_p2), %v771_v3  ;;  %s772_s7 = smov (!%p218_p2), 17   ;;  %vm307_vm2 = vcmask (!%p218_p2), 1047688   ;;  %v312_v20 = vlaneseq (!%p218_p2)  ;;  %vm422_vm4 = vcmask (!%p218_p2), 1039360  }
   0x7   : > { %278 = vperm.xlu0 (!%p218_p2), %726, %v275_v0   ;;  %296 = vst.msk [vmem:[#allocation2 + $0x10] sm:$0xff] (!%p218_p2), %vm295_vm1, %v771_v3  ;;  %s773_s8 = smov (!%p218_p2), 126   ;;  %s774_s9 = smov (!%p218_p2), 127   ;;  %vm370_vm6 = vcmask (!%p218_p2), 916480   ;;  %vm781_vm7 = vmmov (!%p218_p2), 1   ;;  %vm357_vm9 = vcmask (!%p218_p2), 1031168  }
   0x8   : > { %s775_s10 = smov (!%p218_p2), 110   ;;  %s776_s11 = smov (!%p218_p2), 112   ;;  %v313_v23 = vand.u32 (!%p218_p2), 127, %v312_v20  ;;  %vm433_vm13 = vcmask (!%p218_p2), 908288   ;;  %vm383_vm15 = vcmask (!%p218_p2), 900096  }
   0x9   : > { %s777_s12 = smov (!%p218_p2), 96   ;;  %s778_s13 = smov (!%p218_p2), 111  }
   0xa   : > { %s779_s14 = smov (!%p218_p2), 95   ;;  %s780_s15 = smov (!%p218_p2), 94   ;;  %v314_v26 = vadd.s32 (!%p218_p2), 128, %v313_v23  ;;  %v319_v30 = vand.u32 (!%p218_p2), 15, %v313_v23 }
   0xb   : > { %286 = vperm.xlu0 (!%p218_p2), %726, %v283_v2  }
   0xc   : > { %v326_v29 = vand.u32 (!%p218_p2), 15, %v314_v26  ;;  %vm862_vm5 = vcmp.ge.s32.totalorder (!%p218_p2), %v319_v30, 1  ;;  %vm886_vm12 = vcmp.le.s32.totalorder (!%p218_p2), %v319_v30, 14 }
   0xd   : > { %s961_s22 = smov (!%p255_p3, %s654_s22), 1  ;;  %vm882_vm11 = vmpackc.low %vm781_vm7, %vm862_vm5 }
   0xe   : > { %s680_s27 = sshll.u32 %s961_s22, 4  ;;  %vm858_vm3 = vcmp.ge.s32.totalorder %v326_v29, 1  ;;  %vm873_vm10 = vcmp.le.s32.totalorder %v326_v29, 14  ;;  %s663_s23 = sshll.u32 %s961_s22, 3 }
   0xf   : > { %s259_s30 = scalar_lea.vmem %s941_s0, %s680_s27  ;;  %vm869_vm8 = vmpackc.low %vm781_vm7, %vm858_vm3  ;;  %s264_s20 = scalar_lea.vmem %s945_s4, %s680_s27 }
  0x10   : > { %v273_v5 = vld [vmem:[%s259_s30] sm:$0xff]  ;;  %v274_v6 = vld [vmem:[%s259_s30 + $0x8] sm:$0xff]  ;;  %vm689_vm14 = vmpackc.low %vm858_vm3, %vm873_vm10  ;;  %vm444_vm3 = vcmask 777216   ;;  %s268_s26 = scalar_lea.vmem %s946_s5, %s663_s23  ;;  %s272_s27 = scalar_lea.vmem %s947_s6, %s663_s23 }
  0x11   : > { %vm695_vm1 = vmpackc.low %vm873_vm10, %vm781_vm7 }
  0x86   : > { %v279_v4 = vpop.permute.xlu0 %278 }
  0x87   : > { %v281_v7 = vmul.f32 %v279_v4, %v273_v5  ;;  %v282_v9 = vmul.f32 %v279_v4, %v274_v6 }
  0x8a   : > { %v287_v8 = vpop.permute.xlu0 %286 }
  0x8b   : > { %v289_v10 = vadd.f32 %v287_v8, %v281_v7  ;;  %v290_v11 = vadd.f32 %v287_v8, %v282_v9 }
  0x8d   : > { %v291_v12 = vmax.f32 %v289_v10, 0.0  ;;  %v292_v13 = vmax.f32 %v290_v11, 0.0 }
  0x8f   : > { %299 = vrot.lane.b32.xlu1 %v291_v12, %s772_s7 }
  0x93   : > { %301 = vrot.lane.b32.xlu1 %v292_v13, %s772_s7 }
 0x101   : > { %v300_v14 = vpop.permute.xlu1 %299 }
 0x102   : > { %308 = vst.msk [vmem:[#allocation2] sm:$0xff] %vm307_vm2, %v300_v14  ;;  %vm396_vm2 = vcmask 785408  }
 0x105   : > { %v302_v15 = vpop.permute.xlu1 %301 }
 0x106   : > { %v841_v16 = vsel %vm293_vm0, %v300_v14, %v302_v15  ;;  %310 = vst.msk [vmem:[#allocation2 + $0x10] sm:$0xff] %vm293_vm0, %v302_v15  ;;  %vm692_vm0 = vmpackc.low %vm862_vm5, %vm886_vm12  ;;  %vm409_vm5 = vcmask 769024  }
 0x109   : > { %v844_v17 = vld [vmem:[#allocation2] sm:$0xff] }
 0x10a   : > { %351 = vrot.lane.b32.xlu0 %v844_v17, %s773_s8  ;;  %416 = vrot.lane.b32.xlu1 %v844_v17, %s774_s9 }
 0x10d   : > { %v345_v18 = vld [vmem:[#allocation2 + $0x10] sm:$0xff] }
 0x10e   : > { %377 = vrot.lane.b32.xlu0 %v844_v17, %s775_s10  ;;  %364 = vrot.lane.b32.xlu1 %v844_v17, %s776_s11  ;;  %v737_v19 = vpack.i.bf16 %v345_v18, %v841_v16 }
 0x112   : > { %390 = vrot.lane.b32.xlu0 %v844_v17, %s777_s12  ;;  %427 = vrot.lane.b32.xlu1 %v844_v17, %s778_s13 }
 0x116   : > { %738 = vrot.lane.b32.xlu1 %v737_v19, %s776_s11  ;;  %728 = vrot.lane.b32.xlu0 %v737_v19, %s774_s9 }
 0x11a   : > { %748 = vrot.lane.b32.xlu1 %v737_v19, %s778_s13  ;;  %733 = vrot.lane.b32.xlu0 %v737_v19, %s773_s8 }
 0x11e   : > { %758 = vrot.lane.b32.xlu1 %v737_v19, %s779_s14  ;;  %743 = vrot.lane.b32.xlu0 %v737_v19, %s775_s10 }
 0x122   : > { %438 = vrot.lane.b32.xlu1 %v844_v17, %s779_s14  ;;  %753 = vrot.lane.b32.xlu0 %v737_v19, %s777_s12 }
 0x126   : > { %407 = vrot.lane.b32.xlu1 %v345_v18, %s780_s15  ;;  %405 = vrot.lane.b32.xlu0 %v841_v16, %s780_s15 }
 0x12a   : > { %403 = vrot.lane.b32.xlu0 %v844_v17, %s780_s15 }
 0x17c   : > { %v352_v21 = vpop.permute.xlu0 %351  ;;  %v417_v22 = vpop.permute.xlu1 %416 }
 0x180   : > { %v378_v24 = vpop.permute.xlu0 %377  ;;  %v365_v25 = vpop.permute.xlu1 %364 }
 0x184   : > { %v856_v27 = vpop.permute.xlu0 %390  ;;  %v428_v28 = vpop.permute.xlu1 %427 }
 0x188   : > { %v729_v31 = vpop.permute.xlu0 %728  ;;  %v739_v32 = vpop.permute.xlu1 %738 }
 0x189   : > { %v731_v34 = vunpack.i.h.bf16 %v729_v31  ;;  %v730_v35 = vunpack.i.l.bf16 %v729_v31  ;;  %v741_v37 = vunpack.i.h.bf16 %v739_v32  ;;  %v740_v38 = vunpack.i.l.bf16 %v739_v32 }
 0x18b   : > { %v424_v39 = vsel %vm422_vm4, %v730_v35, %v731_v34  ;;  %v423_v41 = vsel %vm422_vm4, %v417_v22, %v730_v35  ;;  %v371_v53 = vsel %vm370_vm6, %v365_v25, %v740_v38  ;;  %v372_v54 = vsel %vm370_vm6, %v740_v38, %v741_v37  ;;  %vm698_vm4 = vmpackc.low %vm886_vm12, %vm781_vm7  ;;  %v311_v22 = vld [vmem:[%s942_s1] sm:$0xff] }
 0x18c   : > { %v734_v42 = vpop.permute.xlu0 %733  ;;  %v749_v43 = vpop.permute.xlu1 %748  ;;  %v682_v45 = vpack.c.bf16 %v424_v39, %v841_v16  ;;  %v685_v46 = vpack.c.bf16 %v423_v41, %v844_v17  ;;  %vm449_vm6 = vcmask 588800   ;;  %vm529_vm7 = vcmask 7168  }
 0x18d   : > { %v736_v48 = vunpack.i.h.bf16 %v734_v42  ;;  %v735_v49 = vunpack.i.l.bf16 %v734_v42  ;;  %v751_v51 = vunpack.i.h.bf16 %v749_v43  ;;  %v750_v52 = vunpack.i.l.bf16 %v749_v43 }
 0x18e   : > { %684 = vmatprep.subr.msk.bf16.mxu0 %vm869_vm8, %v682_v45 }
 0x18f   : > { %v358_v55 = vsel %vm357_vm9, %v352_v21, %v735_v49  ;;  %v359_v56 = vsel %vm357_vm9, %v735_v49, %v736_v48  ;;  %687 = vmatpush1.bf16.msk.msra.mxu0 %vm882_vm11, %v685_v46  ;;  %v434_v63 = vsel %vm433_vm13, %v428_v28, %v750_v52  ;;  %v435_v0 = vsel %vm433_vm13, %v750_v52, %v751_v51 }
 0x190   : > { %v688_v57 = vpack.c.bf16 %v372_v54, %v359_v56  ;;  %v691_v58 = vpack.c.bf16 %v371_v53, %v358_v55  ;;  %v744_v59 = vpop.permute.xlu0 %743  ;;  %v759_v60 = vpop.permute.xlu1 %758 }
 0x191   : > { %v746_v61 = vunpack.i.h.bf16 %v744_v59  ;;  %v745_v62 = vunpack.i.l.bf16 %v744_v59  ;;  %v761_v3 = vunpack.i.h.bf16 %v759_v60  ;;  %v760_v4 = vunpack.i.l.bf16 %v759_v60 }
 0x192   : > { %690 = vmatprep.subr.msk.bf16.mxu0 %vm689_vm14, %v688_v57 }
 0x193   : > { %v384_v1 = vsel %vm383_vm15, %v378_v24, %v745_v62  ;;  %v385_v2 = vsel %vm383_vm15, %v745_v62, %v746_v61  ;;  %693 = vmatpush1.bf16.msk.msra.mxu0 %vm692_vm0, %v691_v58  ;;  %v446_v14 = vsel %vm444_vm3, %v760_v4, %v761_v3 }
 0x194   : > { %v694_v5 = vpack.c.bf16 %v385_v2, %v435_v0  ;;  %v697_v6 = vpack.c.bf16 %v384_v1, %v434_v63  ;;  %v754_v7 = vpop.permute.xlu0 %753  ;;  %v439_v8 = vpop.permute.xlu1 %438 }
 0x195   : > { %v756_v9 = vunpack.i.h.bf16 %v754_v7  ;;  %v755_v10 = vunpack.i.l.bf16 %v754_v7  ;;  %v445_v13 = vsel %vm444_vm3, %v439_v8, %v760_v4 }
 0x196   : > { %696 = vmatprep.subr.msk.bf16.mxu0 %vm695_vm1, %v694_v5 }
 0x197   : > { %v397_v11 = vsel %vm396_vm2, %v856_v27, %v755_v10  ;;  %v398_v12 = vsel %vm396_vm2, %v755_v10, %v756_v9  ;;  %699 = vmatpush1.bf16.msk.msra.mxu0 %vm698_vm4, %v697_v6 }
 0x198   : > { %v700_v15 = vpack.c.bf16 %v446_v14, %v398_v12  ;;  %v703_v16 = vpack.c.bf16 %v445_v13, %v397_v11  ;;  %v406_v17 = vpop.permute.xlu0 %405  ;;  %v408_v18 = vpop.permute.xlu1 %407 }
 0x199   : > { %v411_v19 = vsel %vm409_vm5, %v406_v17, %v408_v18 }
 0x19a   : > { %702 = vmatprep.subr.msk.bf16.mxu0 %vm869_vm8, %v700_v15 }
 0x19b   : > { %705 = vmatpush1.bf16.msk.msra.mxu0 %vm882_vm11, %v703_v16 }
 0x19c   : > { %v404_v20 = vpop.permute.xlu0 %403  ;;  %675 = vmatprep.subr.msk.mxu0 %vm873_vm10, %v411_v19 }
 0x19d   : > { %v410_v21 = vsel %vm409_vm5, %v404_v20, %v406_v17 }
 0x19f   : > { %676 = vmatpush1.msk.msra.mxu0 %vm886_vm12, %v410_v21 }
 0x1a0   : > { %677 = vmatmul.mubr.msk.f32.vlgmr.msra.gmra.mrb[0].mxu0 %vm449_vm6, %v311_v22 }
 0x273   : > { %v519_v23 = vpop.f32.mrb[0].mxu0 }
 0x274   : > { %v521_v24 = vpop.f32.mrb[1].mxu0  ;;  %524 = vst [vmem:[%s264_s20] sm:$0xff] %v519_v23  ;;  %v531_v25 = vmul.f32 %v519_v23, %v519_v23 }
 0x275   : > { %525 = vst [vmem:[%s264_s20 + $0x8] sm:$0xff] %v521_v24  ;;  %v532_v26 = vmul.f32 %v521_v24, %v521_v24  ;;  %v526_v27 = vadd.f32 %v521_v24, %v519_v23 }
 0x277   : > { %527 = vadd.xlane.f32.xlu1 %v526_v27  ;;  %v533_v28 = vadd.f32 %v532_v26, %v531_v25 }
 0x279   : > { %534 = vadd.xlane.f32.xlu0 %v533_v28 }
 0x304   : > { %v528_v29 = vpop.xlane.xlu1 %527 }
 0x305   : > { %530 = vst.msk [vmem:[%s268_s26] sm:$0xff] %vm529_vm7, %v528_v29 }
 0x306   : > { %v535_v30 = vpop.xlane.xlu0 %534 }
 0x307   : > { %536 = vst.msk [vmem:[%s272_s27] sm:$0xff] %vm529_vm7, %v535_v30 }
 0x308 PF: > { %s17_s21 = sadd.s32 1, %s768_s21  }
 0x309   : > { %p14_p4 = scmp.ge.s32.totalorder %s17_s21, 4  }
 0x30b   :  { %16 = sbr.rel (!%p14_p4) target bundleno = 1 (0x1), region = 90 }

// kernel: basic_block_pallas.5
= control target key start
LH: loop header
LB: loop body
LE: loop exit
PB: predicated region body
PF: predicated region fallthrough
CT: control target
= control target key end

     0   :  { %s371_s15 = smov 0   ;;  %s397_s0 = inlined_call_operand.vmem [shape: f32[2,8,256], index: 0, kind: input, shape index: {}]   ;;  %s398_s1 = inlined_call_operand.vmem [shape: f32[2,8,256], index: 1, kind: input, shape index: {}]   ;;  %s399_s2 = inlined_call_operand.vmem [shape: f32[8,1], index: 2, kind: input, shape index: {}]   ;;  %s400_s3 = inlined_call_operand.vmem [shape: f32[8,1], index: 3, kind: input, shape index: {}]   ;;  %s401_s4 = inlined_call_operand.vmem [shape: f32[2,8,256], index: 4, kind: output, shape index: {}]  }
   0x1 LB: > { %s311_s16 = sadd.s32 4294967295, %s343_s15   ;;  %p315_p0 = scmp.ge.s32.totalorder %s343_s15, 1  ;;  %s343_s15 = sphi %s371_s15, %s14_s15  }
   0x2   : > { %p172_p1 = scmp.lt.s32.totalorder %s343_s15, 3 }
   0x4   : > { %p173_p2 = pnand %p315_p0, %p172_p1 }
   0x5   : > { %v220_v0 = vld [vmem:[%s399_s2] sm:$0xff] (!%p173_p2)  ;;  %v345_v1 = vmov (!%p173_p2), 0   ;;  %p203_p3 = scmp.lt.s32.totalorder (!%p173_p2), %s311_s16, 1 }
   0x6   : > { %176 = sbr.rel (%p173_p2) target bundleno = 146 (0x92), region = 36  ;;  %336 = vset.pattern.permute.xlu0 (!%p173_p2), %v345_v1  ;;  %v228_v2 = vld [vmem:[%s400_s3] sm:$0xff] (!%p173_p2) }
   0x7   : > { %223 = vperm.xlu0 (!%p173_p2), %336, %v220_v0  }
   0xb   : > { %231 = vperm.xlu0 (!%p173_p2), %336, %v228_v2  }
   0xd   : > { %s403_s16 = smov (!%p203_p3, %s311_s16), 1 }
   0xe   : > { %s324_s21 = sshll.u32 %s403_s16, 4 }
   0xf   : > { %s207_s24 = scalar_lea.vmem %s397_s0, %s324_s21  ;;  %s212_s27 = scalar_lea.vmem %s398_s1, %s324_s21 }
  0x10   : > { %v218_v4 = vld [vmem:[%s207_s24] sm:$0xff]  ;;  %v219_v5 = vld [vmem:[%s207_s24 + $0x8] sm:$0xff]  ;;  %s217_s30 = scalar_lea.vmem %s401_s4, %s324_s21 }
  0x11   : > { %v236_v9 = vld [vmem:[%s212_s27] sm:$0xff]  ;;  %v237_v10 = vld [vmem:[%s212_s27 + $0x8] sm:$0xff] }
  0x86   : > { %v224_v3 = vpop.permute.xlu0 %223 }
  0x87   : > { %v226_v6 = vmul.f32 %v224_v3, %v218_v4  ;;  %v227_v7 = vmul.f32 %v224_v3, %v219_v5 }
  0x8a   : > { %v232_v8 = vpop.permute.xlu0 %231 }
  0x8b   : > { %v234_v11 = vadd.f32 %v232_v8, %v226_v6  ;;  %v235_v12 = vadd.f32 %v232_v8, %v227_v7 }
  0x8d   : > { %v238_v13 = vadd.f32 %v236_v9, %v234_v11  ;;  %v239_v14 = vadd.f32 %v237_v10, %v235_v12 }
  0x8f   : > { %v240_v15 = vmax.f32 %v238_v13, 0.0  ;;  %v241_v16 = vmax.f32 %v239_v14, 0.0 }
  0x91   : > { %242 = vst [vmem:[%s217_s30] sm:$0xff] %v240_v15  ;;  %243 = vst [vmem:[%s217_s30 + $0x8] sm:$0xff] %v241_v16 }
  0x92 PF: > { %s14_s15 = sadd.s32 1, %s343_s15  }
  0x93   : > { %p11_p4 = scmp.ge.s32.totalorder %s14_s15, 4  }
  0x95   :  { %13 = sbr.rel (!%p11_p4) target bundleno = 1 (0x1), region = 69 }

</bundles_post_ra>
